<compile_context>
chip_gen: v7x
topology: tpu7x:2x2x1
jax: 0.10.0
libtpu: 0.0.40
codegen_flags: <defaults>
</compile_context>

<pallas_src>
import functools
from typing import NamedTuple

import jax
import jax.numpy as jnp
from jax.experimental import pallas as pl
from jax.experimental.pallas import tpu as pltpu


def _round_up(x, m):
    return ((x + m - 1) // m) * m


def _pad2(a, rows, cols, dtype):
    a = jnp.asarray(a, dtype)
    if a.shape == (rows, cols):
        return a
    return jnp.zeros((rows, cols), dtype).at[: a.shape[0], : a.shape[1]].set(a)


# --------------------------------------------------------------------------- #
# Kernel
# --------------------------------------------------------------------------- #
def _dann_kernel(x_ref, wa_ref, ba_ref, wc_ref, bc_ref, out_ref, acc_ref):
    """logits = sigmoid(x @ Wa + ba) @ Wc + bc  for one (batch tile, K tile)."""
    k = pl.program_id(1)

    @pl.when(k == 0)
    def _():
        # Fold the encoder bias into the accumulator init -> no epilogue add.
        acc_ref[...] = jnp.broadcast_to(ba_ref[...], acc_ref.shape)

    # x arrives in its native dtype; cast to bf16 right before the MXU dot
    # (halves wrapper-side activation HBM traffic vs pre-casting in the wrapper).
    acc_ref[...] += jnp.dot(x_ref[...].astype(jnp.bfloat16), wa_ref[...],
                            preferred_element_type=jnp.float32)

    @pl.when(k == pl.num_programs(1) - 1)
    def _():
        h = acc_ref[...]
        # sigmoid = 1/(1+exp(-h)): exp and the approximate reciprocal both land
        # on the EUP slot, keeping the VALU free in the per-tile epilogue.
        z = pl.reciprocal(1.0 + jnp.exp(-h), approx=True)
        # Padded hidden columns give sigmoid(0)~0.5 but hit zero rows of Wc,
        # so they contribute nothing to the logits.
        logits = jnp.dot(z.astype(wc_ref.dtype), wc_ref[...],
                         preferred_element_type=jnp.float32)
        out_ref[...] = (logits + bc_ref[...]).astype(out_ref.dtype)


# --------------------------------------------------------------------------- #
# One-time parameter preparation (pad + cast OUTSIDE the per-call path)
# --------------------------------------------------------------------------- #
class DANNParams(NamedTuple):
    wa_p: jax.Array        # (E_pad, H_pad) bf16, zero-padded
    ba_p: jax.Array        # (1, H_pad)     f32
    wc_p: jax.Array        # (H_pad, C_pad) bf16, zero rows kill padded hidden
    bc_p: jax.Array        # (1, C_pad)     f32
    embedding_size: int
    cls_num: int


def prepare_params(wa_t, ba, wc_t, bc):
    """wa_t: [E, H], ba: [1, H], wc_t: [H, C], bc: [1, C] -> padded bf16/f32."""
    E, H = wa_t.shape
    C = wc_t.shape[1]
    E_pad, H_pad, C_pad = _round_up(E, 128), _round_up(H, 128), _round_up(C, 128)
    return DANNParams(
        wa_p=_pad2(wa_t, E_pad, H_pad, jnp.bfloat16),
        ba_p=_pad2(jnp.reshape(ba, (1, -1)), 1, H_pad, jnp.float32),
        wc_p=_pad2(wc_t, H_pad, C_pad, jnp.bfloat16),
        bc_p=_pad2(jnp.reshape(bc, (1, -1)), 1, C_pad, jnp.float32),
        embedding_size=E,
        cls_num=C,
    )


# --------------------------------------------------------------------------- #
# Per-generation hardware info + tile selection
# --------------------------------------------------------------------------- #
@functools.lru_cache(maxsize=1)
def _hw_info():
    vmem_cap = 64 * 1024 * 1024        # conservative default (v7x per-TC VMEM)
    multi_tc = False
    try:
        vmem_cap = int(pltpu.get_tpu_info().vmem_capacity_bytes)
    except Exception:
        pass
    try:
        kind = jax.devices()[0].device_kind.lower()
        # Megacore / 2-TensorCore parts benefit from >= 2 "parallel" batch tiles.
        multi_tc = any(tag in kind for tag in ("v4", "v5p", "v7"))
    except Exception:
        pass
    return vmem_cap, multi_tc


def _select_tiles(B, E_pad, H_pad, C_pad, block_b, block_k, budget, multi_tc):
    """Pick (bb, tk): batch tile (mult of 16) and K tile (mult of 128 | E_pad)."""
    bb = _round_up(min(block_b, max(B, 1)), 16)
    # Only force a >= 2-way batch split on multi-TensorCore parts.
    if multi_tc and B > 16 and pl.cdiv(B, bb) < 2:
        bb = _round_up(pl.cdiv(B, 2), 16)
    block_k_r = _round_up(block_k, 128)

    def estimate(bb_, tk_):
        return (2 * bb_ * tk_ * 4            # x tiles (native f32, 2 buffers)
                + 2 * tk_ * H_pad * 2        # encoderA weight K-slabs (bf16)
                + 2 * H_pad * C_pad * 2      # classifier weight (bf16, resident)
                + 2 * bb_ * C_pad * 4        # output tiles (f32)
                + bb_ * H_pad * 4            # f32 accumulator scratch
                + 2 * (H_pad + C_pad) * 4 * 8)  # biases (sublane-padded)

    while True:
        # Preferred: n_k == 1 -> encoderA weight is DMA'd once, VMEM-resident.
        if estimate(bb, E_pad) <= budget:
            return bb, E_pad
        # Otherwise: largest multiple-of-128 divisor of E_pad <= block_k that fits.
        for cand in range(min(block_k_r, E_pad), 127, -128):
            if E_pad % cand == 0 and estimate(bb, cand) <= budget:
                return bb, cand
        if bb > 16:
            bb = max(16, _round_up(bb // 2, 16))
            continue
        # Last resort: minimal tiles (VMEM limit will report if still too big).
        # TODO(synk): add an H tile axis instead of shrinking bb for huge H.
        return bb, 128


# --------------------------------------------------------------------------- #
# Forward
# --------------------------------------------------------------------------- #
@functools.partial(jax.jit,
                   static_argnames=("bb", "tk", "cls_num", "vmem_limit"))
def _dann_forward_impl(x, wa_p, ba_p, wc_p, bc_p, *, bb, tk, cls_num, vmem_limit):
    B, E = x.shape
    E_pad, H_pad = wa_p.shape
    C_pad = wc_p.shape[1]
    B_pad = _round_up(B, bb)
    n_b = B_pad // bb
    n_k = E_pad // tk

    # Pad x in its NATIVE dtype (no bf16 copy): batch rows to a bb multiple and
    # columns to E_pad only when E is not already 128-aligned.
    if (B_pad, E_pad) != (B, E):
        x = jnp.zeros((B_pad, E_pad), x.dtype).at[:B, :E].set(x)

    out = pl.pallas_call(
        _dann_kernel,
        out_shape=jax.ShapeDtypeStruct((B_pad, C_pad), jnp.float32),
        grid_spec=pltpu.PrefetchScalarGridSpec(
            num_scalar_prefetch=0,
            grid=(n_b, n_k),
            in_specs=[
                pl.BlockSpec((bb, tk), lambda i, k: (i, k)),        # x tile
                pl.BlockSpec((tk, H_pad), lambda i, k: (k, 0)),     # encoderA W^T
                pl.BlockSpec((1, H_pad), lambda i, k: (0, 0)),      # encoderA bias
                pl.BlockSpec((H_pad, C_pad), lambda i, k: (0, 0)),  # classifier W^T
                pl.BlockSpec((1, C_pad), lambda i, k: (0, 0)),      # classifier bias
            ],
            out_specs=pl.BlockSpec((bb, C_pad), lambda i, k: (i, 0)),
            scratch_shapes=[pltpu.VMEM((bb, H_pad), jnp.float32)],  # f32 accumulator
        ),
        compiler_params=pltpu.CompilerParams(
            dimension_semantics=("parallel", "arbitrary"),
            vmem_limit_bytes=vmem_limit,
        ),
    )(x, wa_p, ba_p, wc_p, bc_p)

    return out[:B, :cls_num]


def dann_forward(x, params: DANNParams, *, block_b=512, block_k=1024):
    """x: [B, embedding_size] -> logits [B, cls_num] (f32)."""
    assert x.ndim == 2 and x.shape[1] == params.embedding_size
    E_pad, H_pad = params.wa_p.shape
    C_pad = params.wc_p.shape[1]

    vmem_cap, multi_tc = _hw_info()
    vmem_limit = max(32 * 1024 * 1024, (vmem_cap * 3) // 4)   # 96 MiB on 128-MiB parts, 48 MiB on v7x
    budget = (vmem_limit * 9) // 10                           # headroom for compiler scratch

    bb, tk = _select_tiles(x.shape[0], E_pad, H_pad, C_pad,
                           block_b, block_k, budget, multi_tc)
    return _dann_forward_impl(x, params.wa_p, params.ba_p, params.wc_p, params.bc_p,
                              bb=bb, tk=tk, cls_num=params.cls_num,
                              vmem_limit=int(vmem_limit))


# --------------------------------------------------------------------------- #
# Init + references + self-test
# --------------------------------------------------------------------------- #
def init_params(key, embedding_size, hidden_size, cls_num):
    """torch.nn.Linear-style init (uniform +-1/sqrt(fan_in)), weights stored [in, out]."""
    k1, k2, k3, k4 = jax.random.split(key, 4)
    lim_a = 1.0 / (embedding_size ** 0.5)
    lim_c = 1.0 / (hidden_size ** 0.5)
    wa_t = jax.random.uniform(k1, (embedding_size, hidden_size), jnp.float32, -lim_a, lim_a)
    ba = jax.random.uniform(k2, (1, hidden_size), jnp.float32, -lim_a, lim_a)
    wc_t = jax.random.uniform(k3, (hidden_size, cls_num), jnp.float32, -lim_c, lim_c)
    bc = jax.random.uniform(k4, (1, cls_num), jnp.float32, -lim_c, lim_c)
    return wa_t, ba, wc_t, bc


def reference_forward_bf16(x, wa_t, ba, wc_t, bc):
    """Same bf16-operand / f32-accumulate numerics as the kernel."""
    xb, wab, wcb = (a.astype(jnp.bfloat16) for a in (x, wa_t, wc_t))
    h = jnp.dot(xb, wab, preferred_element_type=jnp.float32) + ba
    z = jax.nn.sigmoid(h)
    return jnp.dot(z.astype(jnp.bfloat16), wcb,
                   preferred_element_type=jnp.float32) + bc


def reference_forward_f32(x, wa_t, ba, wc_t, bc):
    """Pure-f32 reference mirroring the PyTorch module semantics."""
    z = jax.nn.sigmoid(x @ wa_t + ba)
    return z @ wc_t + bc


if __name__ == "__main__":
    # Small shapes consistent with the module: batch=16, embedding=32,
    # hidden=32, cls_num=12.
    B, E, H, C = 16, 32, 32, 12

    key = jax.random.PRNGKey(0)
    kx, kp = jax.random.split(key)
    x = jax.random.normal(kx, (B, E), jnp.float32)
    wa_t, ba, wc_t, bc = init_params(kp, E, H, C)

    # One-time weight preparation (pad + cast happens here, not per forward).
    params = prepare_params(wa_t, ba, wc_t, bc)

    out = dann_forward(x, params)
    out = jax.block_until_ready(out)

    assert out.shape == (B, C)
    ref_bf16 = reference_forward_bf16(x, wa_t, ba, wc_t, bc)
    assert jnp.allclose(out, ref_bf16, atol=1e-2, rtol=1e-2), "mismatch vs bf16 reference"
    ref_f32 = reference_forward_f32(x, wa_t, ba, wc_t, bc)
    assert jnp.allclose(out, ref_f32, atol=5e-2, rtol=5e-2), "mismatch vs f32 reference"

    print("KERNEL_OK")
</pallas_src>

<mosaic_0001>
module attributes {stable_mosaic.version = 11 : i64} {
  func.func @_dann_kernel(%arg0: i32, %arg1: i32, %arg2: memref<16x128xf32, #tpu.memory_space<vmem>>, %arg3: memref<128x128xbf16, #tpu.memory_space<vmem>>, %arg4: memref<1x128xf32, #tpu.memory_space<vmem>>, %arg5: memref<128x128xbf16, #tpu.memory_space<vmem>>, %arg6: memref<1x128xf32, #tpu.memory_space<vmem>>, %arg7: memref<16x128xf32, #tpu.memory_space<vmem>>, %arg8: memref<16x128xf32, #tpu.memory_space<vmem>>) attributes {dimension_semantics = [#tpu.dimension_semantics<parallel>, #tpu.dimension_semantics<arbitrary>], iteration_bounds = array<i64: 1, 1>, scalar_prefetch = 0 : i64, scratch_operands = 1 : i64, tpu.core_type = #tpu.core_type<tc>, window_params = [{transform_indices = @transform_0, window_bounds = array<i64: 16, 128>}, {transform_indices = @transform_1, window_bounds = array<i64: 128, 128>}, {pipeline_mode = #tpu.pipeline_mode<synchronous>, transform_indices = @transform_2, window_bounds = array<i64: 1, 128>}, {pipeline_mode = #tpu.pipeline_mode<synchronous>, transform_indices = @transform_3, window_bounds = array<i64: 128, 128>}, {pipeline_mode = #tpu.pipeline_mode<synchronous>, transform_indices = @transform_4, window_bounds = array<i64: 1, 128>}, {transform_indices = @transform_5, window_bounds = array<i64: 16, 128>}]} {
    %c0_i32 = arith.constant 0 : i32
    %0 = arith.cmpi eq, %arg1, %c0_i32 : i32
    %1 = arith.extui %0 : i1 to i32
    %c0_i32_0 = arith.constant 0 : i32
    %2 = arith.cmpi ne, %1, %c0_i32_0 : i32
    scf.if %2 {
      %c0_10 = arith.constant 0 : index
      %c0_11 = arith.constant 0 : index
      %13 = vector.load %arg4[%c0_10, %c0_11] : memref<1x128xf32, #tpu.memory_space<vmem>>, vector<1x128xf32>
      %14 = vector.shape_cast %13 : vector<1x128xf32> to vector<1x128xf32>
      %15 = vector.broadcast %14 : vector<1x128xf32> to vector<16x128xf32>
      %c0_12 = arith.constant 0 : index
      %c0_13 = arith.constant 0 : index
      %16 = vector.load %arg8[%c0_12, %c0_13] : memref<16x128xf32, #tpu.memory_space<vmem>>, vector<16x128xf32>
      tpu.vector_store %arg8[%c0_12, %c0_13], %15 {strides = array<i32>} : memref<16x128xf32, #tpu.memory_space<vmem>>, vector<16x128xf32>,
    } else {
    }
    %c0 = arith.constant 0 : index
    %c0_1 = arith.constant 0 : index
    %3 = vector.load %arg8[%c0, %c0_1] : memref<16x128xf32, #tpu.memory_space<vmem>>, vector<16x128xf32>
    %c0_2 = arith.constant 0 : index
    %c0_3 = arith.constant 0 : index
    %4 = vector.load %arg2[%c0_2, %c0_3] : memref<16x128xf32, #tpu.memory_space<vmem>>, vector<16x128xf32>
    %5 = arith.truncf %4 : vector<16x128xf32> to vector<16x128xbf16>
    %c0_4 = arith.constant 0 : index
    %c0_5 = arith.constant 0 : index
    %6 = vector.load %arg3[%c0_4, %c0_5] : memref<128x128xbf16, #tpu.memory_space<vmem>>, vector<128x128xbf16>
    %cst = arith.constant dense<0.000000e+00> : vector<16x128xf32>
    %7 = tpu.matmul %5, %6, %cst {dimension_numbers = #tpu.dot_dimension_numbers<[1], [0], [0], [1], [0, 0, 1, 1], [], []>} : vector<16x128xbf16>, vector<128x128xbf16>, vector<16x128xf32> -> vector<16x128xf32>
    %8 = arith.addf %3, %7 : vector<16x128xf32>
    %c0_6 = arith.constant 0 : index
    %c0_7 = arith.constant 0 : index
    %9 = vector.load %arg8[%c0_6, %c0_7] : memref<16x128xf32, #tpu.memory_space<vmem>>, vector<16x128xf32>
    tpu.vector_store %arg8[%c0_6, %c0_7], %8 {strides = array<i32>} : memref<16x128xf32, #tpu.memory_space<vmem>>, vector<16x128xf32>,
    %c0_i32_8 = arith.constant 0 : i32
    %10 = arith.cmpi eq, %arg1, %c0_i32_8 : i32
    %11 = arith.extui %10 : i1 to i32
    %c0_i32_9 = arith.constant 0 : i32
    %12 = arith.cmpi ne, %11, %c0_i32_9 : i32
    scf.if %12 {
      %c0_10 = arith.constant 0 : index
      %c0_11 = arith.constant 0 : index
      %13 = vector.load %arg8[%c0_10, %c0_11] : memref<16x128xf32, #tpu.memory_space<vmem>>, vector<16x128xf32>
      %cst_12 = arith.constant 0.000000e+00 : f32
      %14 = vector.broadcast %cst_12 : f32 to vector<16x128xf32>
      %15 = arith.subf %14, %13 : vector<16x128xf32>
      %16 = math.exp %15 : vector<16x128xf32>
      %cst_13 = arith.constant 1.000000e+00 : f32
      %17 = vector.broadcast %cst_13 : f32 to vector<16x128xf32>
      %18 = arith.addf %17, %16 : vector<16x128xf32>
      %19 = tpu.reciprocal %18 {approx = true} : vector<16x128xf32> -> vector<16x128xf32>
      %20 = arith.truncf %19 : vector<16x128xf32> to vector<16x128xbf16>
      %c0_14 = arith.constant 0 : index
      %c0_15 = arith.constant 0 : index
      %21 = vector.load %arg5[%c0_14, %c0_15] : memref<128x128xbf16, #tpu.memory_space<vmem>>, vector<128x128xbf16>
      %cst_16 = arith.constant dense<0.000000e+00> : vector<16x128xf32>
      %22 = tpu.matmul %20, %21, %cst_16 {dimension_numbers = #tpu.dot_dimension_numbers<[1], [0], [0], [1], [0, 0, 1, 1], [], []>} : vector<16x128xbf16>, vector<128x128xbf16>, vector<16x128xf32> -> vector<16x128xf32>
      %c0_17 = arith.constant 0 : index
      %c0_18 = arith.constant 0 : index
      %23 = vector.load %arg6[%c0_17, %c0_18] : memref<1x128xf32, #tpu.memory_space<vmem>>, vector<1x128xf32>
      %24 = vector.broadcast %23 : vector<1x128xf32> to vector<16x128xf32>
      %25 = arith.addf %22, %24 : vector<16x128xf32>
      %c0_19 = arith.constant 0 : index
      %c0_20 = arith.constant 0 : index
      %26 = vector.load %arg7[%c0_19, %c0_20] : memref<16x128xf32, #tpu.memory_space<vmem>>, vector<16x128xf32>
      tpu.vector_store %arg7[%c0_19, %c0_20], %25 {strides = array<i32>} : memref<16x128xf32, #tpu.memory_space<vmem>>, vector<16x128xf32>,
    } else {
    }
    return
  }
  func.func @transform_0(%arg0: i32, %arg1: i32) -> (i32, i32) {
    %c0_i32 = arith.constant 0 : i32
    return %arg0, %arg1 : i32, i32
  }
  func.func @transform_1(%arg0: i32, %arg1: i32) -> (i32, i32) {
    %c0_i32 = arith.constant 0 : i32
    %c0_i32_0 = arith.constant 0 : i32
    return %arg1, %c0_i32 : i32, i32
  }
  func.func @transform_2(%arg0: i32, %arg1: i32) -> (i32, i32) {
    %c0_i32 = arith.constant 0 : i32
    %c0_i32_0 = arith.constant 0 : i32
    %c0_i32_1 = arith.constant 0 : i32
    return %c0_i32, %c0_i32_0 : i32, i32
  }
  func.func @transform_3(%arg0: i32, %arg1: i32) -> (i32, i32) {
    %c0_i32 = arith.constant 0 : i32
    %c0_i32_0 = arith.constant 0 : i32
    %c0_i32_1 = arith.constant 0 : i32
    return %c0_i32, %c0_i32_0 : i32, i32
  }
  func.func @transform_4(%arg0: i32, %arg1: i32) -> (i32, i32) {
    %c0_i32 = arith.constant 0 : i32
    %c0_i32_0 = arith.constant 0 : i32
    %c0_i32_1 = arith.constant 0 : i32
    return %c0_i32, %c0_i32_0 : i32, i32
  }
  func.func @transform_5(%arg0: i32, %arg1: i32) -> (i32, i32) {
    %c0_i32 = arith.constant 0 : i32
    %c0_i32_0 = arith.constant 0 : i32
    return %arg0, %c0_i32 : i32, i32
  }
}

</mosaic_0001>

<bundles_post_ra>
// kernel: _dann_forward_impl.1
= control target key start
LH: loop header
LB: loop body
LE: loop exit
PB: predicated region body
PF: predicated region fallthrough
CT: control target
= control target key end

     0   :  { %10 = vsyncpa [#allocation4], 0  ;;  %s564_s0 = inlined_call_operand.vmem [shape: f32[16,128], index: 0, kind: input, shape index: {}]   ;;  %s565_s1 = inlined_call_operand.vmem [shape: bf16[128,128], index: 1, kind: input, shape index: {}]   ;;  %s566_s2 = inlined_call_operand.vmem [shape: f32[1,128], index: 2, kind: input, shape index: {}]   ;;  %s567_s3 = inlined_call_operand.hbm [shape: bf16[128,128], index: 3, kind: input, shape index: {}]   ;;  %s568_s4 = inlined_call_operand.vmem [shape: f32[1,128], index: 4, kind: input, shape index: {}]   ;;  %s569_s5 = inlined_call_operand.hbm [shape: f32[16,128], index: 5, kind: output, shape index: {}]  }
   0x1   :  { %11 = vsyncpa [#allocation5], 0  ;;  %s466_s18 = smov [#allocation3]   ;;  %s418_s22 = scalar_lea.hbm %s567_s3, 1024 }
   0x2   :  { %s23_s19 = sshll.u32 %s466_s18, 4  ;;  %p419_p0 = scmp.ne.s32.totalorder %s567_s3, %s418_s22  ;;  %s24_s19 = int_to_ptr.vmem [resolvable:$true] %s23_s19 }
   0x3   :  { %p422_p1 = scmp.lt.u32.totalorder %s418_s22, %s567_s3 }
   0x5   :  { %p424_p2 = pnand %p422_p1, %p419_p0 }
   0x7   :  { %427 = shalt.err (!%p424_p2)
}
   0x8   :  { %s428_s27 = scalar_lea.vmem %s24_s19, 1024  ;;  %p433_p4 = scmp.lt.s32.totalorder %s24_s19, %s24_s19 }
   0x9   :  { %p429_p3 = scmp.ne.s32.totalorder %s24_s19, %s428_s27  ;;  %p434_p5 = scmp.lt.s32.totalorder %s428_s27, %s428_s27 }
   0xb   :  { %p435_p6 = por %p434_p5, %p433_p4 }
   0xd   :  { %p436_p7 = pnand %p435_p6, %p429_p3 }
   0xf   :  { %439 = shalt.err (!%p436_p7)
}
  0x10   :  { %s467_s28 = smov 64   ;;  %s468_s29 = smov 4  }
  0x11   :  { %29 = dma.hbm_to_vmem [thread:$0]  %s567_s3, 1024, %s24_s19, [#allocation4], %s467_s28, %s467_s28, %s468_s29  }
  0x12   :  { %462 = dma.done.wait [#allocation4], 1024  }
  0x13   :  { %463 = vsyncadd [#allocation4], 4294966272  ;;  %v469_v0 = vmov 0.0   ;;  %vm470_vm0 = vmmov 0   ;;  %v394_v1 = vld [vmem:[%s565_s1] sm:$0xff]   ;;  %v395_v2 = vld [vmem:[%s565_s1 + $0x8] sm:$0xff]  }
  0x14   :  { %346 = vmatprep.subr.bf16.mxu0 %v469_v0  ;;  %362 = vmatprep.mubr.msk.bf16.mxu0 %vm470_vm0, %v469_v0  ;;  %v396_v3 = vld [vmem:[%s565_s1 + $0x10] sm:$0xff]   ;;  %v397_v4 = vld [vmem:[%s565_s1 + $0x18] sm:$0xff]   ;;  %v398_v5 = vld [vmem:[%s565_s1 + $0x20] sm:$0xff]   ;;  %s471_s27 = smov [#allocation6]  }
  0x15   :  { %366 = vmatprep.subr.bf16.mxu1 %v469_v0  ;;  %382 = vmatprep.mubr.msk.bf16.mxu1 %vm470_vm0, %v469_v0  ;;  %v399_v6 = vld [vmem:[%s565_s1 + $0x28] sm:$0xff]   ;;  %v400_v7 = vld [vmem:[%s565_s1 + $0x30] sm:$0xff]   ;;  %v401_v8 = vld [vmem:[%s565_s1 + $0x38] sm:$0xff]   ;;  %s298_s28 = sshll.u32 %s471_s27, 4  ;;  %s299_s28 = int_to_ptr.vmem [resolvable:$true] %s298_s28 }
  0x16   :  { %347 = vmatpush3.bf16.msra.mxu0 %v394_v1  ;;  %v51_v9 = vld [vmem:[%s564_s0] sm:$0xff]  ;;  %v52_v10 = vld [vmem:[%s564_s0 + $0x8] sm:$0xff]  ;;  %v404_v14 = vld [vmem:[#allocation3 + $0x10] sm:$0xff]   ;;  %s440_s29 = scalar_lea.vmem %s299_s28, 256  ;;  %p445_p9 = scmp.lt.s32.totalorder %s299_s28, %s299_s28 }
  0x17   :  { %348 = vmatprep.subr.bf16.mxu0 %v469_v0  ;;  %v53_v11 = vpack.c.bf16 %v52_v10, %v51_v9  ;;  %v402_v12 = vld [vmem:[#allocation3] sm:$0xff]   ;;  %v403_v13 = vld [vmem:[#allocation3 + $0x8] sm:$0xff]   ;;  %v405_v15 = vld [vmem:[#allocation3 + $0x18] sm:$0xff]   ;;  %p441_p8 = scmp.ne.s32.totalorder %s299_s28, %s440_s29  ;;  %p446_p10 = scmp.lt.s32.totalorder %s440_s29, %s440_s29 }
  0x18   :  { %367 = vmatpush3.bf16.msra.mxu1 %v402_v12  ;;  %v406_v16 = vld [vmem:[#allocation3 + $0x20] sm:$0xff]   ;;  %v407_v17 = vld [vmem:[#allocation3 + $0x28] sm:$0xff]   ;;  %v408_v18 = vld [vmem:[#allocation3 + $0x30] sm:$0xff]  }
  0x19   :  { %368 = vmatprep.subr.bf16.mxu1 %v469_v0  ;;  %v409_v19 = vld [vmem:[#allocation3 + $0x38] sm:$0xff]   ;;  %v310_v20 = vld [vmem:[%s566_s2] ss:$0 sm:$0xff]  ;;  %p447_p11 = por %p446_p10, %p445_p9 }
  0x1a   :  { %349 = vmatpush3.bf16.msra.mxu0 %v395_v2  ;;  %v319_v38 = vld [vmem:[%s568_s4] ss:$0 sm:$0xff] }
  0x1b   :  { %350 = vmatprep.subr.bf16.mxu0 %v469_v0  ;;  %p448_p12 = pnand %p447_p11, %p441_p8 }
  0x1c   :  { %369 = vmatpush3.bf16.msra.mxu1 %v403_v13 }
  0x1d   :  { %370 = vmatprep.subr.bf16.mxu1 %v469_v0 }
  0x1e   :  { %351 = vmatpush3.bf16.msra.mxu0 %v396_v3 }
  0x1f   :  { %352 = vmatprep.subr.bf16.mxu0 %v469_v0 }
  0x20   :  { %371 = vmatpush3.bf16.msra.mxu1 %v404_v14 }
  0x21   :  { %372 = vmatprep.subr.bf16.mxu1 %v469_v0 }
  0x22   :  { %353 = vmatpush3.bf16.msra.mxu0 %v397_v4 }
  0x23   :  { %354 = vmatprep.subr.bf16.mxu0 %v469_v0 }
  0x24   :  { %373 = vmatpush3.bf16.msra.mxu1 %v405_v15 }
  0x25   :  { %374 = vmatprep.subr.bf16.mxu1 %v469_v0 }
  0x26   :  { %355 = vmatpush3.bf16.msra.mxu0 %v398_v5 }
  0x27   :  { %356 = vmatprep.subr.bf16.mxu0 %v469_v0 }
  0x28   :  { %375 = vmatpush3.bf16.msra.mxu1 %v406_v16 }
  0x29   :  { %376 = vmatprep.subr.bf16.mxu1 %v469_v0 }
  0x2a   :  { %357 = vmatpush3.bf16.msra.mxu0 %v399_v6 }
  0x2b   :  { %358 = vmatprep.subr.bf16.mxu0 %v469_v0 }
  0x2c   :  { %377 = vmatpush3.bf16.msra.mxu1 %v407_v17 }
  0x2d   :  { %378 = vmatprep.subr.bf16.mxu1 %v469_v0 }
  0x2e   :  { %359 = vmatpush3.bf16.msra.mxu0 %v400_v7 }
  0x2f   :  { %360 = vmatprep.subr.bf16.mxu0 %v469_v0 }
  0x30   :  { %379 = vmatpush3.bf16.msra.mxu1 %v408_v18 }
  0x31   :  { %380 = vmatprep.subr.bf16.mxu1 %v469_v0 }
  0x32   :  { %361 = vmatpush3.bf16.msra.mxu0 %v401_v8 }
  0x34   :  { %381 = vmatpush3.bf16.msra.mxu1 %v409_v19 }
  0x35   :  { %363 = vmatmul.mubr.bf16.vlgmr.msra.gmra.mrb[0].mxu0 %v53_v11 }
 0x108   :  { %v152_v21 = vpop.f32.mrb[0].mxu0 }
 0x109   :  { %v159_v22 = vadd.f32 %v310_v20, %v152_v21  ;;  %v364_v23 = vpop.f32.mrb[1].mxu0 }
 0x10a   :  { %v155_v24 = vpop.f32.mrb[2].mxu0 }
 0x10b   :  { %v168_v25 = vsub.f32 0.0, %v159_v22  ;;  %v160_v26 = vadd.f32 %v310_v20, %v155_v24  ;;  %v365_v27 = vpop.f32.mrb[3].mxu0 }
 0x10d   :  { %v170_v28 = vmul.f32 1.442695, %v168_v25  ;;  %v169_v29 = vsub.f32 0.0, %v160_v26 }
 0x10f   :  { %410 = vpow2.f32 %v170_v28  ;;  %v172_v30 = vmul.f32 1.442695, %v169_v29 }
 0x111   :  { %412 = vpow2.f32 %v172_v30 }
 0x119   :  { %v411_v31 = vpop.eup %410 }
 0x11a   :  { %v174_v32 = vadd.f32 1.0, %v411_v31 }
 0x11b   :  { %v413_v33 = vpop.eup %412 }
 0x11c   :  { %v175_v34 = vadd.f32 1.0, %v413_v33  ;;  %414 = vrcp.f32 %v174_v32 }
 0x11e   :  { %416 = vrcp.f32 %v175_v34 }
 0x126   :  { %v415_v35 = vpop.eup %414 }
 0x128   :  { %v417_v36 = vpop.eup %416 }
 0x129   :  { %v178_v37 = vpack.c.bf16 %v417_v36, %v415_v35 }
 0x12b   :  { %383 = vmatmul.mubr.bf16.vlgmr.msra.gmra.mrb[0].mxu1 %v178_v37 }
 0x1fe   :  { %v284_v39 = vpop.f32.mrb[0].mxu1 }
 0x1ff   :  { %v285_v40 = vadd.f32 %v319_v38, %v284_v39  ;;  %v384_v41 = vpop.f32.mrb[1].mxu1 }
 0x200   :  { %v287_v42 = vpop.f32.mrb[2].mxu1 }
 0x201   :  { %291 = vst [vmem:[#allocation6] sm:$0xff] %v285_v40  ;;  %v288_v43 = vadd.f32 %v319_v38, %v287_v42  ;;  %v385_v44 = vpop.f32.mrb[3].mxu1 }
 0x203   :  { %292 = vst [vmem:[#allocation6 + $0x8] sm:$0xff] %v288_v43 }
 0x204   :  { %451 = shalt.err (!%p448_p12)
}
 0x205   :  { %s452_s6 = scalar_lea.hbm %s569_s5, 256 }
 0x206   :  { %p453_p13 = scmp.ne.s32.totalorder %s569_s5, %s452_s6  ;;  %p456_p0 = scmp.lt.u32.totalorder %s452_s6, %s569_s5 }
 0x208   :  { %p458_p1 = pnand %p456_p0, %p453_p13 }
 0x20a   :  { %461 = shalt.err (!%p458_p1)
}
 0x20b   :  { %s472_s3 = smov 128   ;;  %s473_s11 = smov 8  }
 0x20c   :  { %304 = dma.vmem_to_hbm [thread:$0]  %s299_s28, 256, %s569_s5, [#allocation5], %s472_s3, %s472_s3, %s473_s11  }
 0x20d   :  { %464 = dma.done.wait [#allocation5], 256  }
 0x20e   :  { %465 = vsyncadd [#allocation5], 4294967040 }
 0x20f   :  { %308 = vsyncpa [#allocation4], 1 }
 0x210   :  { %309 = vsyncpa [#allocation5], 1 }

</bundles_post_ra>
